<compile_context>
chip_gen: v7x
topology: tpu7x:2x2x1
jax: 0.10.0
libtpu: 0.0.40
codegen_flags: <defaults>
</compile_context>

<pallas_src>
import math

import jax
import jax.numpy as jnp
from jax.experimental import pallas as pl
from jax.experimental.pallas import tpu as pltpu


def fused_linear_kernel(x_ref, w_ref, b_ref, o_ref):
    # Single fused layer: [TB, 10] @ [10, 5] + [1, 5]
    o_ref[...] = (
        jnp.dot(x_ref[...], w_ref[...], preferred_element_type=jnp.float32)
        + b_ref[...]
    ).astype(o_ref.dtype)


_SMALL_BATCH_THRESHOLD = 512   # below this, a single block beats any pipeline
_BATCH_TILE = 512              # >=512 amortizes per-step overhead; multiple of 8


def mymodel_forward(x, w1, b1, w2, b2):
    """x: [B, 10]; w1: [20, 10]; b1: [20]; w2: [5, 20]; b2: [5] (PyTorch layout)."""
    B, in_dim = x.shape
    out_dim = w2.shape[0]

    # Algebraic fusion (valid only because there is no nonlinearity between layers):
    #   (x @ W1^T + b1) @ W2^T + b2  ==  x @ (W2 @ W1)^T + (W2 @ b1 + b2)
    w_fused = jnp.transpose(w2 @ w1)          # [10, 5]
    b_fused = (w2 @ b1 + b2).reshape(1, -1)   # [1, 5] (row so it broadcasts over batch)

    if B <= _SMALL_BATCH_THRESHOLD:
        # Degenerate-size path: one full-extent VMEM block, no grid, no pipelining.
        return pl.pallas_call(
            fused_linear_kernel,
            out_shape=jax.ShapeDtypeStruct((B, out_dim), x.dtype),
            in_specs=[
                pl.BlockSpec(memory_space=pltpu.MemorySpace.VMEM),
                pl.BlockSpec(memory_space=pltpu.MemorySpace.VMEM),
                pl.BlockSpec(memory_space=pltpu.MemorySpace.VMEM),
            ],
            out_specs=pl.BlockSpec(memory_space=pltpu.MemorySpace.VMEM),
        )(x, w_fused, b_fused)

    # Large-batch path: stream x/y over a batch grid; fused weight/bias stay
    # VMEM-resident (constant block index) for the whole grid.
    TB = _BATCH_TILE
    return pl.pallas_call(
        fused_linear_kernel,
        out_shape=jax.ShapeDtypeStruct((B, out_dim), x.dtype),
        grid_spec=pltpu.PrefetchScalarGridSpec(
            num_scalar_prefetch=0,
            grid=(pl.cdiv(B, TB),),
            in_specs=[
                pl.BlockSpec((TB, in_dim), lambda i: (i, 0)),
                pl.BlockSpec(w_fused.shape, lambda i: (0, 0)),
                pl.BlockSpec(b_fused.shape, lambda i: (0, 0)),
            ],
            out_specs=pl.BlockSpec((TB, out_dim), lambda i: (i, 0)),
        ),
        compiler_params=pltpu.CompilerParams(
            # "parallel" shards the batch axis across v7x's 2 TensorCores.
            dimension_semantics=("parallel",),
        ),
    )(x, w_fused, b_fused)


def init_linear_params(key, out_features, in_features):
    """Deterministic init mirroring nn.Linear defaults (kaiming-uniform a=sqrt(5))."""
    kw, kb = jax.random.split(key)
    bound = 1.0 / math.sqrt(in_features)
    w = jax.random.uniform(kw, (out_features, in_features), jnp.float32,
                           minval=-bound, maxval=bound)
    b = jax.random.uniform(kb, (out_features,), jnp.float32,
                           minval=-bound, maxval=bound)
    return w, b


if __name__ == "__main__":
    key = jax.random.PRNGKey(0)
    k_x, k_x_big, k_fc1, k_fc2 = jax.random.split(key, 4)

    w1, b1 = init_linear_params(k_fc1, 20, 10)   # fc1: Linear(10, 20)
    w2, b2 = init_linear_params(k_fc2, 5, 20)    # fc2: Linear(20, 5)

    def reference(xv):
        return (xv @ w1.T + b1) @ w2.T + b2

    # Small-batch (gridless) path.
    B = 8
    x = jax.random.normal(k_x, (B, 10), jnp.float32)
    out = jax.block_until_ready(mymodel_forward(x, w1, b1, w2, b2))
    assert out.shape == (B, 5)
    assert jnp.allclose(out, reference(x), atol=1e-5, rtol=1e-5)

    # Large-batch (batch-tiled, weights VMEM-resident) path.
    B_big = 1024
    x_big = jax.random.normal(k_x_big, (B_big, 10), jnp.float32)
    out_big = jax.block_until_ready(mymodel_forward(x_big, w1, b1, w2, b2))
    assert out_big.shape == (B_big, 5)
    assert jnp.allclose(out_big, reference(x_big), atol=1e-5, rtol=1e-5)

    print("KERNEL_OK")
</pallas_src>

<mosaic_0001>
module attributes {stable_mosaic.version = 11 : i64} {
  func.func @fused_linear_kernel(%arg0: memref<8x10xf32, #tpu.memory_space<vmem>>, %arg1: memref<10x5xf32, #tpu.memory_space<vmem>>, %arg2: memref<1x5xf32, #tpu.memory_space<vmem>>, %arg3: memref<8x5xf32, #tpu.memory_space<vmem>>) attributes {dimension_semantics = [], scalar_prefetch = 0 : i64, scratch_operands = 0 : i64, tpu.core_type = #tpu.core_type<tc>} {
    %c0 = arith.constant 0 : index
    %c0_0 = arith.constant 0 : index
    %0 = vector.load %arg0[%c0, %c0_0] : memref<8x10xf32, #tpu.memory_space<vmem>>, vector<8x10xf32>
    %c0_1 = arith.constant 0 : index
    %c0_2 = arith.constant 0 : index
    %1 = vector.load %arg1[%c0_1, %c0_2] : memref<10x5xf32, #tpu.memory_space<vmem>>, vector<10x5xf32>
    %cst = arith.constant dense<0.000000e+00> : vector<8x5xf32>
    %2 = tpu.matmul %0, %1, %cst {dimension_numbers = #tpu.dot_dimension_numbers<[1], [0], [0], [1], [0, 0, 1, 1], [], []>} : vector<8x10xf32>, vector<10x5xf32>, vector<8x5xf32> -> vector<8x5xf32>
    %c0_3 = arith.constant 0 : index
    %c0_4 = arith.constant 0 : index
    %3 = vector.load %arg2[%c0_3, %c0_4] : memref<1x5xf32, #tpu.memory_space<vmem>>, vector<1x5xf32>
    %4 = vector.broadcast %3 : vector<1x5xf32> to vector<8x5xf32>
    %5 = arith.addf %2, %4 : vector<8x5xf32>
    %c0_5 = arith.constant 0 : index
    %c0_6 = arith.constant 0 : index
    %6 = vector.load %arg3[%c0_5, %c0_6] : memref<8x5xf32, #tpu.memory_space<vmem>>, vector<8x5xf32>
    tpu.vector_store %arg3[%c0_5, %c0_6], %5 {strides = array<i32>} : memref<8x5xf32, #tpu.memory_space<vmem>>, vector<8x5xf32>,
    return
  }
}

</mosaic_0001>

<bundles_post_ra>
// kernel: tpu_custom_call.1
= control target key start
LH: loop header
LB: loop body
LE: loop exit
PB: predicated region body
PF: predicated region fallthrough
CT: control target
= control target key end

     0   :  { %vm29_vm0 = vcmask 1041408   ;;  %v165_v2 = vmov 0.0|0.0   ;;  %vm166_vm1 = vmmov 1   ;;  %vm167_vm3 = vmmov 0   ;;  %s214_s0 = inlined_call_operand.vmem [shape: f32[8,10], index: 0, kind: input, shape index: {}]   ;;  %s215_s1 = inlined_call_operand.vmem [shape: f32[10,5], index: 1, kind: input, shape index: {}]   ;;  %s216_s2 = inlined_call_operand.vmem [shape: f32[1,5], index: 2, kind: input, shape index: {}]   ;;  %s217_s3 = inlined_call_operand.hbm [shape: f32[8,5], index: 3, kind: output, shape index: {}]  }
   0x1   :  { %v16_v0 = vld [vmem:[%s215_s1] sm:$0xff]  ;;  %v17_v1 = vld [vmem:[%s215_s1 + $0x8] sm:$0x3]  ;;  %132 = vmatprep.subr.bf16.mxu0 %v165_v2  ;;  %vm134_vm2 = vmpackc.low %vm29_vm0, %vm166_vm1  ;;  %v168_v4 = vmov 0.0  }
   0x2   :  { %v133_v3 = vpack.c.bf16 %v17_v1, %v16_v0  ;;  %129 = vmatprep.mubr.msk.f32.mxu0 %vm167_vm3, %v168_v4 }
   0x3   :  { %8 = vsyncpa [#allocation3], 0  ;;  %v15_v5 = vld [vmem:[%s214_s0] sm:$0xff]  ;;  %vm25_vm4 = vcmask 80896   ;;  %s169_s1 = smov [#allocation2]   ;;  %vm103_vm5 = vcmask 39936  }
   0x4   :  { %135 = vmatpush3.bf16.msk.msra.mxu0 %vm134_vm2, %v133_v3  ;;  %v119_v6 = vld [vmem:[%s216_s2] ss:$0 sm:$0xff]  ;;  %s111_s20 = sshll.u32 %s169_s1, 4  ;;  %s112_s20 = int_to_ptr.vmem [resolvable:$true] %s111_s20 }
   0x5   :  { %s141_s21 = scalar_lea.vmem %s112_s20, 128  ;;  %p146_p1 = scmp.lt.s32.totalorder %s112_s20, %s112_s20 }
   0x6   :  { %p142_p0 = scmp.ne.s32.totalorder %s112_s20, %s141_s21  ;;  %p147_p2 = scmp.lt.s32.totalorder %s141_s21, %s141_s21 }
   0x7   :  { %130 = vmatmul.mubr.msk.f32.vlgmr.msra.gmra.mrb[0].mxu0 %vm25_vm4, %v15_v5 }
   0x8   :  { %p148_p3 = por %p147_p2, %p146_p1 }
   0xa   :  { %p149_p4 = pnand %p148_p3, %p142_p0 }
  0xda   :  { %v99_v7 = vpop.f32.mrb[0].mxu0 }
  0xdb   :  { %v100_v8 = vadd.f32 %v119_v6, %v99_v7  ;;  %v131_v9 = vpop.f32.mrb[1].mxu0 }
  0xdd   :  { %104 = vst.msk [vmem:[#allocation2] sm:$0xff] %vm103_vm5, %v100_v8 }
  0xde   :  { %152 = shalt.err (!%p149_p4)
}
  0xdf   :  { %s153_s23 = scalar_lea.hbm %s217_s3, 128 }
  0xe0   :  { %p154_p5 = scmp.ne.s32.totalorder %s217_s3, %s153_s23  ;;  %p157_p6 = scmp.lt.u32.totalorder %s153_s23, %s217_s3 }
  0xe2   :  { %p159_p7 = pnand %p157_p6, %p154_p5 }
  0xe4   :  { %162 = shalt.err (!%p159_p7)
}
  0xe5   :  { %114 = dma.vmem_to_hbm [thread:$0]  %s112_s20, 128, %s217_s3, [#allocation3]  }
  0xe6   :  { %163 = dma.done.wait [#allocation3], 128  }
  0xe7   :  { %164 = vsyncadd [#allocation3], 4294967168 }
  0xe8   :  { %118 = vsyncpa [#allocation3], 1 }

</bundles_post_ra>
